<compile_context>
chip_gen: v6e
topology: v6e:2x2x1
jax: 0.10.0
libtpu: 0.0.40
codegen_flags: <defaults>
</compile_context>

<pallas_src>
import jax
import jax.numpy as jnp
from jax.experimental import pallas as pl
from jax.experimental.pallas import tpu as pltpu

_LANE = 128
_PACK = 8 * _LANE  # 1024: batch granularity so (rows, 128) blocks are (8,128)-aligned


def _sigmoid_eup(z):
    # logistic(z) == 0.5 * tanh(z/2) + 0.5 : one EUP push, no precise divide.
    return 0.5 * jnp.tanh(0.5 * z) + 0.5


def mlp_kernel(p_ref, x_ref, o_ref):
    # p_ref: (11,) f32 in SMEM -- [w1 (3x2 row-major, (in,out)), b1 (2), w2 (2), b2 (1)]
    # x_ref: (3, R, 128) f32 in VMEM, batch packed dense across sublanes x lanes
    # o_ref: (R, 128) f32 in VMEM
    x0 = x_ref[0]  # (R, 128) dense slab
    x1 = x_ref[1]
    x2 = x_ref[2]

    w1_00 = p_ref[0]; w1_01 = p_ref[1]
    w1_10 = p_ref[2]; w1_11 = p_ref[3]
    w1_20 = p_ref[4]; w1_21 = p_ref[5]
    b1_0 = p_ref[6];  b1_1 = p_ref[7]
    w2_0 = p_ref[8];  w2_1 = p_ref[9]
    b2_0 = p_ref[10]

    # layer 1 on the VPU (broadcast scalar * slab), sigmoid on the EUP
    h0 = _sigmoid_eup(w1_00 * x0 + w1_10 * x1 + w1_20 * x2 + b1_0)
    h1 = _sigmoid_eup(w1_01 * x0 + w1_11 * x1 + w1_21 * x2 + b1_1)
    # layer 2
    y = _sigmoid_eup(w2_0 * h0 + w2_1 * h1 + b2_0)
    o_ref[...] = y.astype(o_ref.dtype)


def _round_up(x, m):
    return (x + m - 1) // m * m


def mlp_forward(x, w1, b1, w2, b2, *, max_tile=262144):
    """x: (B, 3) f32. w1: (3, 2) (in,out), b1: (2,), w2: (2, 1), b2: (1,). Returns (B, 1)."""
    B = x.shape[0]
    b_pad = _round_up(max(B, 1), _PACK)

    # Tile sizing: large tiles to amortize per-step overhead, but keep >= 2
    # balanced tiles when possible so v7x's 2 TensorCores can split the grid.
    n_tiles = pl.cdiv(b_pad, max_tile)
    if b_pad >= 2 * _PACK:
        n_tiles = max(n_tiles, 2)
    tb = _round_up(pl.cdiv(b_pad, n_tiles), _PACK)
    n_tiles = pl.cdiv(b_pad, tb)
    b_pad = n_tiles * tb
    rows = b_pad // _LANE
    tile_rows = tb // _LANE

    # Channel-major relayout + pad as one fused transpose+pad copy, then a free
    # reshape that packs the batch across sublanes x lanes.
    # TODO(synk): accept channel-major (3, B) input from the producer to drop this pass entirely.
    xt = jnp.pad(x.T.astype(jnp.float32), ((0, 0), (0, b_pad - B)))
    xt = xt.reshape(3, rows, _LANE)

    params = jnp.concatenate(
        [w1.reshape(-1), b1.reshape(-1), w2.reshape(-1), b2.reshape(-1)]
    ).astype(jnp.float32)  # (11,)

    out = pl.pallas_call(
        mlp_kernel,
        out_shape=jax.ShapeDtypeStruct((rows, _LANE), jnp.float32),
        grid=(n_tiles,),
        in_specs=[
            pl.BlockSpec(memory_space=pltpu.MemorySpace.SMEM),         # 11 param scalars
            pl.BlockSpec((3, tile_rows, _LANE), lambda i: (0, i, 0)),  # dense input slab
        ],
        out_specs=pl.BlockSpec((tile_rows, _LANE), lambda i: (i, 0)),  # dense output slab
        compiler_params=pltpu.CompilerParams(
            dimension_semantics=("parallel",),  # shard batch grid across TCs (v7x)
            vmem_limit_bytes=32 << 20,          # clear v5e's 16 MiB scoped default
        ),
    )(params, xt)

    # (rows, 128) -> (b_pad,) -> slice padding -> (B, 1)
    return out.reshape(b_pad)[:B].reshape(B, 1)


def init_params(key):
    """Deterministic init mimicking torch.nn.Linear (U[-1/sqrt(fan_in), +])."""
    k1, k2, k3, k4 = jax.random.split(key, 4)
    bound1 = 1.0 / jnp.sqrt(3.0)  # fan_in = 3
    bound2 = 1.0 / jnp.sqrt(2.0)  # fan_in = 2
    # stored already transposed relative to torch: (in, out)
    w1 = jax.random.uniform(k1, (3, 2), jnp.float32, -bound1, bound1)
    b1 = jax.random.uniform(k2, (2,), jnp.float32, -bound1, bound1)
    w2 = jax.random.uniform(k3, (2, 1), jnp.float32, -bound2, bound2)
    b2 = jax.random.uniform(k4, (1,), jnp.float32, -bound2, bound2)
    return w1, b1, w2, b2


if __name__ == "__main__":
    key = jax.random.PRNGKey(0)
    k_params, k_x = jax.random.split(key)
    w1, b1, w2, b2 = init_params(k_params)

    batch = 8
    x = jax.random.normal(k_x, (batch, 3), jnp.float32)

    y = mlp_forward(x, w1, b1, w2, b2)
    y = jax.block_until_ready(y)

    # reference check in plain JAX
    ref = jax.nn.sigmoid(jax.nn.sigmoid(x @ w1 + b1) @ w2 + b2)
    assert y.shape == (batch, 1)
    assert jnp.allclose(y, ref, atol=1e-4, rtol=1e-4)

    print("KERNEL_OK")
</pallas_src>

<mosaic_0001>
module attributes {stable_mosaic.version = 11 : i64} {
  func.func @mlp_kernel(%arg0: i32, %arg1: memref<11xf32, #tpu.memory_space<smem>>, %arg2: memref<3x8x128xf32, #tpu.memory_space<vmem>>, %arg3: memref<8x128xf32, #tpu.memory_space<vmem>>) attributes {dimension_semantics = [#tpu.dimension_semantics<parallel>], iteration_bounds = array<i64: 1>, scalar_prefetch = 0 : i64, scratch_operands = 0 : i64, tpu.core_type = #tpu.core_type<tc>, window_params = [{transform_indices = @transform_0, window_bounds = array<i64: 11>}, {transform_indices = @transform_1, window_bounds = array<i64: 3, 8, 128>}, {transform_indices = @transform_2, window_bounds = array<i64: 8, 128>}]} {
    %c0 = arith.constant 0 : index
    %c0_0 = arith.constant 0 : index
    %c0_1 = arith.constant 0 : index
    %0 = vector.load %arg2[%c0, %c0_0, %c0_1] : memref<3x8x128xf32, #tpu.memory_space<vmem>>, vector<1x8x128xf32>
    %1 = vector.shape_cast %0 : vector<1x8x128xf32> to vector<8x128xf32>
    %c1 = arith.constant 1 : index
    %c0_2 = arith.constant 0 : index
    %c0_3 = arith.constant 0 : index
    %2 = vector.load %arg2[%c1, %c0_2, %c0_3] : memref<3x8x128xf32, #tpu.memory_space<vmem>>, vector<1x8x128xf32>
    %3 = vector.shape_cast %2 : vector<1x8x128xf32> to vector<8x128xf32>
    %c2 = arith.constant 2 : index
    %c0_4 = arith.constant 0 : index
    %c0_5 = arith.constant 0 : index
    %4 = vector.load %arg2[%c2, %c0_4, %c0_5] : memref<3x8x128xf32, #tpu.memory_space<vmem>>, vector<1x8x128xf32>
    %5 = vector.shape_cast %4 : vector<1x8x128xf32> to vector<8x128xf32>
    %c0_6 = arith.constant 0 : index
    %6 = memref.load %arg1[%c0_6] : memref<11xf32, #tpu.memory_space<smem>>
    %c1_7 = arith.constant 1 : index
    %7 = memref.load %arg1[%c1_7] : memref<11xf32, #tpu.memory_space<smem>>
    %c2_8 = arith.constant 2 : index
    %8 = memref.load %arg1[%c2_8] : memref<11xf32, #tpu.memory_space<smem>>
    %c3 = arith.constant 3 : index
    %9 = memref.load %arg1[%c3] : memref<11xf32, #tpu.memory_space<smem>>
    %c4 = arith.constant 4 : index
    %10 = memref.load %arg1[%c4] : memref<11xf32, #tpu.memory_space<smem>>
    %c5 = arith.constant 5 : index
    %11 = memref.load %arg1[%c5] : memref<11xf32, #tpu.memory_space<smem>>
    %c6 = arith.constant 6 : index
    %12 = memref.load %arg1[%c6] : memref<11xf32, #tpu.memory_space<smem>>
    %c7 = arith.constant 7 : index
    %13 = memref.load %arg1[%c7] : memref<11xf32, #tpu.memory_space<smem>>
    %c8 = arith.constant 8 : index
    %14 = memref.load %arg1[%c8] : memref<11xf32, #tpu.memory_space<smem>>
    %c9 = arith.constant 9 : index
    %15 = memref.load %arg1[%c9] : memref<11xf32, #tpu.memory_space<smem>>
    %c10 = arith.constant 10 : index
    %16 = memref.load %arg1[%c10] : memref<11xf32, #tpu.memory_space<smem>>
    %17 = vector.broadcast %6 : f32 to vector<8x128xf32>
    %18 = arith.mulf %17, %1 : vector<8x128xf32>
    %19 = vector.broadcast %8 : f32 to vector<8x128xf32>
    %20 = arith.mulf %19, %3 : vector<8x128xf32>
    %21 = arith.addf %18, %20 : vector<8x128xf32>
    %22 = vector.broadcast %10 : f32 to vector<8x128xf32>
    %23 = arith.mulf %22, %5 : vector<8x128xf32>
    %24 = arith.addf %21, %23 : vector<8x128xf32>
    %25 = vector.broadcast %12 : f32 to vector<8x128xf32>
    %26 = arith.addf %24, %25 : vector<8x128xf32>
    %cst = arith.constant 5.000000e-01 : f32
    %27 = vector.broadcast %cst : f32 to vector<8x128xf32>
    %28 = arith.mulf %27, %26 : vector<8x128xf32>
    %29 = math.tanh %28 : vector<8x128xf32>
    %cst_9 = arith.constant 5.000000e-01 : f32
    %30 = vector.broadcast %cst_9 : f32 to vector<8x128xf32>
    %31 = arith.mulf %30, %29 : vector<8x128xf32>
    %cst_10 = arith.constant 5.000000e-01 : f32
    %32 = vector.broadcast %cst_10 : f32 to vector<8x128xf32>
    %33 = arith.addf %31, %32 : vector<8x128xf32>
    %34 = vector.broadcast %7 : f32 to vector<8x128xf32>
    %35 = arith.mulf %34, %1 : vector<8x128xf32>
    %36 = vector.broadcast %9 : f32 to vector<8x128xf32>
    %37 = arith.mulf %36, %3 : vector<8x128xf32>
    %38 = arith.addf %35, %37 : vector<8x128xf32>
    %39 = vector.broadcast %11 : f32 to vector<8x128xf32>
    %40 = arith.mulf %39, %5 : vector<8x128xf32>
    %41 = arith.addf %38, %40 : vector<8x128xf32>
    %42 = vector.broadcast %13 : f32 to vector<8x128xf32>
    %43 = arith.addf %41, %42 : vector<8x128xf32>
    %cst_11 = arith.constant 5.000000e-01 : f32
    %44 = vector.broadcast %cst_11 : f32 to vector<8x128xf32>
    %45 = arith.mulf %44, %43 : vector<8x128xf32>
    %46 = math.tanh %45 : vector<8x128xf32>
    %cst_12 = arith.constant 5.000000e-01 : f32
    %47 = vector.broadcast %cst_12 : f32 to vector<8x128xf32>
    %48 = arith.mulf %47, %46 : vector<8x128xf32>
    %cst_13 = arith.constant 5.000000e-01 : f32
    %49 = vector.broadcast %cst_13 : f32 to vector<8x128xf32>
    %50 = arith.addf %48, %49 : vector<8x128xf32>
    %51 = vector.broadcast %14 : f32 to vector<8x128xf32>
    %52 = arith.mulf %51, %33 : vector<8x128xf32>
    %53 = vector.broadcast %15 : f32 to vector<8x128xf32>
    %54 = arith.mulf %53, %50 : vector<8x128xf32>
    %55 = arith.addf %52, %54 : vector<8x128xf32>
    %56 = vector.broadcast %16 : f32 to vector<8x128xf32>
    %57 = arith.addf %55, %56 : vector<8x128xf32>
    %cst_14 = arith.constant 5.000000e-01 : f32
    %58 = vector.broadcast %cst_14 : f32 to vector<8x128xf32>
    %59 = arith.mulf %58, %57 : vector<8x128xf32>
    %60 = math.tanh %59 : vector<8x128xf32>
    %cst_15 = arith.constant 5.000000e-01 : f32
    %61 = vector.broadcast %cst_15 : f32 to vector<8x128xf32>
    %62 = arith.mulf %61, %60 : vector<8x128xf32>
    %cst_16 = arith.constant 5.000000e-01 : f32
    %63 = vector.broadcast %cst_16 : f32 to vector<8x128xf32>
    %64 = arith.addf %62, %63 : vector<8x128xf32>
    %c0_17 = arith.constant 0 : index
    %c0_18 = arith.constant 0 : index
    %65 = vector.load %arg3[%c0_17, %c0_18] : memref<8x128xf32, #tpu.memory_space<vmem>>, vector<8x128xf32>
    tpu.vector_store %arg3[%c0_17, %c0_18], %64 {strides = array<i32>} : memref<8x128xf32, #tpu.memory_space<vmem>>, vector<8x128xf32>,
    return
  }
  func.func @transform_0(%arg0: i32) -> i32 {
    %c0_i32 = arith.constant 0 : i32
    %c0_i32_0 = arith.constant 0 : i32
    return %c0_i32 : i32
  }
  func.func @transform_1(%arg0: i32) -> (i32, i32, i32) {
    %c0_i32 = arith.constant 0 : i32
    %c0_i32_0 = arith.constant 0 : i32
    %c0_i32_1 = arith.constant 0 : i32
    return %c0_i32, %arg0, %c0_i32_0 : i32, i32, i32
  }
  func.func @transform_2(%arg0: i32) -> (i32, i32) {
    %c0_i32 = arith.constant 0 : i32
    %c0_i32_0 = arith.constant 0 : i32
    return %arg0, %c0_i32 : i32, i32
  }
}

</mosaic_0001>

<bundles_post_ra>
// kernel: tpu_custom_call.1
= control target key start
LH: loop header
LB: loop body
LE: loop exit
PB: predicated region body
PF: predicated region fallthrough
CT: control target
= control target key end

     0   :  { %7 = vsyncpa [#allocation5], 0  ;;  %s213_s0 = inlined_call_operand.hbm [shape: f32[11], index: 0, kind: input, shape index: {}]   ;;  %s214_s1 = inlined_call_operand.hbm [shape: f32[3,8,128], index: 1, kind: input, shape index: {}]   ;;  %s215_s2 = inlined_call_operand.hbm [shape: f32[8,128], index: 2, kind: output, shape index: {}]  }
   0x1   :  { %8 = vsyncpa [#allocation3], 0 }
   0x2   :  { %9 = vsyncpa [#allocation4], 0  ;;  %s184_s9 = smov [#allocation2]   ;;  %s185_s12 = smov [#allocation6]  }
   0x3   :  { %17 = dma.hbm_to_smem %s213_s0, 16, %s184_s9, [#allocation5]  }
   0x4   :  { %s23_s13 = sshll.u32 %s185_s12, 4  ;;  %s24_s13 = int_to_ptr.vmem [resolvable:$true] %s23_s13 }
   0x5   :  { %s146_s14 = scalar_lea.vmem %s24_s13, 384  ;;  %p151_p1 = scmp.lt.s32.totalorder %s24_s13, %s24_s13 }
   0x6   :  { %p147_p0 = scmp.ne.s32.totalorder %s24_s13, %s146_s14  ;;  %p152_p2 = scmp.lt.s32.totalorder %s146_s14, %s146_s14 }
   0x8   :  { %p153_p3 = por %p152_p2, %p151_p1 }
   0xa   :  { %p154_p4 = pnand %p153_p3, %p147_p0 }
   0xc   :  { %157 = shalt.err (!%p154_p4)
}
   0xd   :  { %s186_s15 = smov 128   ;;  %s187_s16 = smov 8  }
   0xe   :  { %29 = dma.hbm_to_vmem [thread:$0]  %s214_s1, 384, %s24_s13, [#allocation3], %s186_s15, %s186_s15, %s187_s16  }
   0xf   :  { %178 = dma.done.wait [#allocation5], 16  }
  0x10   :  { %179 = vsyncadd [#allocation5], 4294967280 }
  0x11   :  { %180 = dma.done.wait [#allocation3], 384  }
  0x12   :  { %181 = vsyncadd [#allocation3], 4294966912 }
  0x13   :  { %36 = sfence }
  0x14   :  { %s42_s0 = sld [smem:[#allocation2]]  ;;  %v37_v0 = vld [vmem:[#allocation6] sm:$0xff]  ;;  %v39_v1 = vld [vmem:[#allocation6 + $0x8] sm:$0xff]  ;;  %v41_v5 = vld [vmem:[#allocation6 + $0x10] sm:$0xff]  ;;  %s188_s28 = smov [#allocation7]  }
  0x15   :  { %s109_s19 = sld [smem:[#allocation2 + $0x1]]  ;;  %s99_s29 = sshll.u32 %s188_s28, 4  ;;  %s100_s29 = int_to_ptr.vmem [resolvable:$true] %s99_s29 }
  0x16   :  { %s110_s20 = sld [smem:[#allocation2 + $0x2]]  ;;  %s158_s30 = scalar_lea.vmem %s100_s29, 128 }
  0x17   :  { %s111_s21 = sld [smem:[#allocation2 + $0x3]]  ;;  %p159_p5 = scmp.ne.s32.totalorder %s100_s29, %s158_s30 }
  0x18   :  { %s112_s22 = sld [smem:[#allocation2 + $0x4]]  ;;  %p163_p6 = scmp.lt.s32.totalorder %s100_s29, %s100_s29 }
  0x19   :  { %s113_s23 = sld [smem:[#allocation2 + $0x5]]  ;;  %p164_p7 = scmp.lt.s32.totalorder %s158_s30, %s158_s30 }
  0x1a   :  { %s114_s24 = sld [smem:[#allocation2 + $0x6]]  ;;  %v53_v2 = vstv %s42_s0 }
  0x1b   :  { %s115_s25 = sld [smem:[#allocation2 + $0x7]]  ;;  %v54_v3 = vmul.f32 %v53_v2, %v37_v0  ;;  %v67_v4 = vstv %s109_s19  ;;  %p165_p8 = por %p164_p7, %p163_p6 }
  0x1c   :  { %v55_v6 = vstv %s110_s20  ;;  %v68_v7 = vmul.f32 %v67_v4, %v37_v0  ;;  %s116_s1 = sld [smem:[#allocation2 + $0x8]] }
  0x1d   :  { %v56_v8 = vmul.f32 %v55_v6, %v39_v1  ;;  %v69_v9 = vstv %s111_s21  ;;  %s117_s26 = sld [smem:[#allocation2 + $0x9]]  ;;  %p166_p9 = pnand %p165_p8, %p159_p5 }
  0x1e   :  { %v58_v10 = vstv %s112_s22  ;;  %v70_v11 = vmul.f32 %v69_v9, %v39_v1  ;;  %s118_s27 = sld [smem:[#allocation2 + $0xa]] }
  0x1f   :  { %v57_v12 = vadd.f32 %v56_v8, %v54_v3  ;;  %v59_v13 = vmul.f32 %v58_v10, %v41_v5  ;;  %v72_v14 = vstv %s113_s23 }
  0x20   :  { %v61_v15 = vstv %s114_s24  ;;  %v71_v16 = vadd.f32 %v70_v11, %v68_v7  ;;  %v73_v17 = vmul.f32 %v72_v14, %v41_v5 }
  0x21   :  { %v60_v18 = vadd.f32 %v59_v13, %v57_v12  ;;  %v75_v19 = vstv %s115_s25 }
  0x22   :  { %v74_v20 = vadd.f32 %v73_v17, %v71_v16  ;;  %v81_v29 = vstv %s116_s1 }
  0x23   :  { %v62_v21 = vadd.f32 %v61_v15, %v60_v18  ;;  %v83_v31 = vstv %s117_s26 }
  0x24   :  { %v76_v22 = vadd.f32 %v75_v19, %v74_v20  ;;  %v86_v35 = vstv %s118_s27 }
  0x25   :  { %v63_v23 = vmul.f32 0.5, %v62_v21 }
  0x26   :  { %v77_v24 = vmul.f32 0.5, %v76_v22 }
  0x27   :  { %124 = vtanh.f32 %v63_v23 }
  0x28   :  { %126 = vtanh.f32 %v77_v24 }
  0x34   :  { %v125_v25 = vpop.eup %124 }
  0x35   :  { %v127_v26 = vpop.eup %126  ;;  %v65_v27 = vmul.f32 0.5, %v125_v25 }
  0x36   :  { %v79_v28 = vmul.f32 0.5, %v127_v26 }
  0x37   :  { %v66_v30 = vadd.f32 0.5, %v65_v27 }
  0x38   :  { %v80_v32 = vadd.f32 0.5, %v79_v28 }
  0x39   :  { %v82_v33 = vmul.f32 %v81_v29, %v66_v30 }
  0x3a   :  { %v84_v34 = vmul.f32 %v83_v31, %v80_v32 }
  0x3c   :  { %v85_v36 = vadd.f32 %v84_v34, %v82_v33 }
  0x3e   :  { %v87_v37 = vadd.f32 %v86_v35, %v85_v36 }
  0x40   :  { %v88_v38 = vmul.f32 0.5, %v87_v37 }
  0x42   :  { %128 = vtanh.f32 %v88_v38 }
  0x4f   :  { %v129_v39 = vpop.eup %128 }
  0x50   :  { %v90_v40 = vmul.f32 0.5, %v129_v39 }
  0x52   :  { %v91_v41 = vadd.f32 0.5, %v90_v40 }
  0x54   :  { %92 = vst [vmem:[#allocation7] sm:$0xff] %v91_v41 }
  0x55   :  { %169 = shalt.err (!%p166_p9)
}
  0x56   :  { %102 = dma.vmem_to_hbm [thread:$0]  %s100_s29, 128, %s215_s2, [#allocation4]  }
  0x57   :  { %182 = dma.done.wait [#allocation4], 128  }
  0x58   :  { %183 = vsyncadd [#allocation4], 4294967168 }
  0x59   :  { %106 = vsyncpa [#allocation3], 1 }
  0x5a   :  { %107 = vsyncpa [#allocation4], 1 }
  0x5b   :  { %108 = vsyncpa [#allocation5], 1 }

</bundles_post_ra>
